<compile_context>
chip_gen: v7x
topology: tpu7x:2x2x1
jax: 0.10.0
libtpu: 0.0.40
codegen_flags: <defaults>
</compile_context>

<pallas_src>
import jax
import jax.numpy as jnp
from jax.experimental import pallas as pl
from jax.experimental.pallas import tpu as pltpu


def _model_kernel(wb_ref, x_ref, o_ref):
    # wb_ref: SMEM (6,) = [w00, w01, w10, w11, b0, b1]
    # x_ref:  VMEM (2, block_rows, lanes)  (plane 0 = feature 0, plane 1 = feature 1)
    # o_ref:  VMEM (block_rows, lanes)
    w00 = wb_ref[0]
    w01 = wb_ref[1]
    w10 = wb_ref[2]
    w11 = wb_ref[3]
    b0 = wb_ref[4]
    b1 = wb_ref[5]

    x0 = x_ref[0]
    x1 = x_ref[1]

    # Linear(2,2) on the VPU with scalar-broadcast weights, then
    # min over the out-feature dim and a single relu6 clip (monotone => same
    # result as clipping each branch first).
    y0 = x0 * w00 + x1 * w01 + b0
    y1 = x0 * w10 + x1 * w11 + b1
    o_ref[...] = jnp.clip(jnp.minimum(y0, y1), 0.0, 6.0)


def _round_up(a, m):
    return ((a + m - 1) // m) * m


@jax.jit
def model_forward(x, weight, bias):
    """x: (B, C, H, 2) float; returns (B, C, H) float32 (== v6)."""
    B, C, H, F = x.shape
    assert F == 2 and weight.shape == (2, 2) and bias.shape == (2,)
    N = B * C * H

    # ---- tile sizing -------------------------------------------------------
    lanes = 512                                   # lane-dense, multiple of 128
    max_block_rows = 1024                         # 2 MiB output plane per block
    rows_needed = _round_up(pl.cdiv(N, lanes), 8)
    if rows_needed >= 16:
        # Keep lanes wide; shrink rows. Ensure >= 2 blocks so v7x's two
        # TensorCores both issue DMAs on the "parallel" grid axis.
        block_rows = min(max_block_rows, _round_up(pl.cdiv(rows_needed, 2), 8))
    else:
        block_rows = rows_needed                  # tiny input: single 8-row block
    num_blocks = pl.cdiv(rows_needed, block_rows)
    rows = num_blocks * block_rows
    padded = rows * lanes

    # ---- input packing (fuses into one pass under this jit) ---------------
    x = x.astype(jnp.float32)
    x01 = jnp.stack([x[..., 0].reshape(-1), x[..., 1].reshape(-1)])  # (2, N)
    pad = padded - N
    if pad:
        x01 = jnp.pad(x01, ((0, 0), (0, pad)))
    x01 = x01.reshape(2, rows, lanes)

    # [w00, w01, w10, w11, b0, b1] as SMEM scalars.
    wb = jnp.concatenate([weight.reshape(-1), bias.reshape(-1)]).astype(jnp.float32)

    out = pl.pallas_call(
        _model_kernel,
        out_shape=jax.ShapeDtypeStruct((rows, lanes), jnp.float32),
        grid=(num_blocks,),
        in_specs=[
            pl.BlockSpec(memory_space=pltpu.MemorySpace.SMEM),
            pl.BlockSpec((2, block_rows, lanes), lambda i: (0, i, 0)),
        ],
        out_specs=pl.BlockSpec((block_rows, lanes), lambda i: (i, 0)),
        compiler_params=pltpu.CompilerParams(
            dimension_semantics=("parallel",),
            vmem_limit_bytes=32 * 1024 * 1024,
        ),
        cost_estimate=pl.CostEstimate(
            flops=8 * padded,
            transcendentals=0,
            bytes_accessed=12 * padded,  # 2 f32 in + 1 f32 out per element
        ),
    )(wb, x01)

    return out.reshape(-1)[:N].reshape(B, C, H)


def reference_forward(x, weight, bias):
    # Pure-JAX reference of the PyTorch math (for the returned v6 only).
    v1 = jnp.einsum("bchf,of->bcho", x.astype(jnp.float32), weight) + bias
    v2 = jnp.clip(v1, 0.0, 6.0)
    v3 = jnp.transpose(v2, (0, 1, 3, 2))
    return jnp.min(v3, axis=2)


if __name__ == "__main__":
    key = jax.random.PRNGKey(0)
    kx, kw, kb, kx2 = jax.random.split(key, 4)

    # Deterministic Linear(2, 2) init (PyTorch-style uniform(-1/sqrt(in), 1/sqrt(in))).
    bound = 1.0 / jnp.sqrt(2.0)
    weight = jax.random.uniform(kw, (2, 2), jnp.float32, -bound, bound)
    bias = jax.random.uniform(kb, (2,), jnp.float32, -bound, bound)

    # Small shape consistent with the module: last dim must be 2 (Linear(2,2)).
    B, C, H, F = 2, 4, 8, 2
    x = jax.random.normal(kx, (B, C, H, F), dtype=jnp.float32)

    v6 = model_forward(x, weight, bias)
    jax.block_until_ready(v6)
    ref = reference_forward(x, weight, bias)
    assert v6.shape == (B, C, H)
    assert jnp.allclose(v6, ref, atol=1e-5, rtol=1e-5)

    # Second check with a larger shape so the multi-block parallel grid is exercised.
    B2, C2, H2 = 4, 8, 512
    x_big = jax.random.normal(kx2, (B2, C2, H2, F), dtype=jnp.float32)
    v6_big = model_forward(x_big, weight, bias)
    jax.block_until_ready(v6_big)
    ref_big = reference_forward(x_big, weight, bias)
    assert v6_big.shape == (B2, C2, H2)
    assert jnp.allclose(v6_big, ref_big, atol=1e-5, rtol=1e-5)

    print("KERNEL_OK")
</pallas_src>

<mosaic_0001>
module attributes {stable_mosaic.version = 11 : i64} {
  func.func @_model_kernel(%arg0: i32, %arg1: memref<6xf32, #tpu.memory_space<smem>>, %arg2: memref<2x8x512xf32, #tpu.memory_space<vmem>>, %arg3: memref<8x512xf32, #tpu.memory_space<vmem>>) attributes {dimension_semantics = [#tpu.dimension_semantics<parallel>], iteration_bounds = array<i64: 1>, scalar_prefetch = 0 : i64, scratch_operands = 0 : i64, tpu.core_type = #tpu.core_type<tc>, window_params = [{transform_indices = @transform_0, window_bounds = array<i64: 6>}, {transform_indices = @transform_1, window_bounds = array<i64: 2, 8, 512>}, {transform_indices = @transform_2, window_bounds = array<i64: 8, 512>}]} {
    %c0 = arith.constant 0 : index
    %0 = memref.load %arg1[%c0] : memref<6xf32, #tpu.memory_space<smem>>
    %c1 = arith.constant 1 : index
    %1 = memref.load %arg1[%c1] : memref<6xf32, #tpu.memory_space<smem>>
    %c2 = arith.constant 2 : index
    %2 = memref.load %arg1[%c2] : memref<6xf32, #tpu.memory_space<smem>>
    %c3 = arith.constant 3 : index
    %3 = memref.load %arg1[%c3] : memref<6xf32, #tpu.memory_space<smem>>
    %c4 = arith.constant 4 : index
    %4 = memref.load %arg1[%c4] : memref<6xf32, #tpu.memory_space<smem>>
    %c5 = arith.constant 5 : index
    %5 = memref.load %arg1[%c5] : memref<6xf32, #tpu.memory_space<smem>>
    %c0_0 = arith.constant 0 : index
    %c0_1 = arith.constant 0 : index
    %c0_2 = arith.constant 0 : index
    %6 = vector.load %arg2[%c0_0, %c0_1, %c0_2] : memref<2x8x512xf32, #tpu.memory_space<vmem>>, vector<1x8x512xf32>
    %7 = vector.shape_cast %6 : vector<1x8x512xf32> to vector<8x512xf32>
    %c1_3 = arith.constant 1 : index
    %c0_4 = arith.constant 0 : index
    %c0_5 = arith.constant 0 : index
    %8 = vector.load %arg2[%c1_3, %c0_4, %c0_5] : memref<2x8x512xf32, #tpu.memory_space<vmem>>, vector<1x8x512xf32>
    %9 = vector.shape_cast %8 : vector<1x8x512xf32> to vector<8x512xf32>
    %10 = vector.broadcast %0 : f32 to vector<8x512xf32>
    %11 = arith.mulf %7, %10 : vector<8x512xf32>
    %12 = vector.broadcast %1 : f32 to vector<8x512xf32>
    %13 = arith.mulf %9, %12 : vector<8x512xf32>
    %14 = arith.addf %11, %13 : vector<8x512xf32>
    %15 = vector.broadcast %4 : f32 to vector<8x512xf32>
    %16 = arith.addf %14, %15 : vector<8x512xf32>
    %17 = vector.broadcast %2 : f32 to vector<8x512xf32>
    %18 = arith.mulf %7, %17 : vector<8x512xf32>
    %19 = vector.broadcast %3 : f32 to vector<8x512xf32>
    %20 = arith.mulf %9, %19 : vector<8x512xf32>
    %21 = arith.addf %18, %20 : vector<8x512xf32>
    %22 = vector.broadcast %5 : f32 to vector<8x512xf32>
    %23 = arith.addf %21, %22 : vector<8x512xf32>
    %24 = arith.minimumf %16, %23 : vector<8x512xf32>
    %cst = arith.constant 0.000000e+00 : f32
    %cst_6 = arith.constant 6.000000e+00 : f32
    %25 = vector.broadcast %cst : f32 to vector<8x512xf32>
    %26 = arith.maximumf %25, %24 : vector<8x512xf32>
    %27 = vector.broadcast %cst_6 : f32 to vector<8x512xf32>
    %28 = arith.minimumf %27, %26 : vector<8x512xf32>
    %c0_7 = arith.constant 0 : index
    %c0_8 = arith.constant 0 : index
    %29 = vector.load %arg3[%c0_7, %c0_8] : memref<8x512xf32, #tpu.memory_space<vmem>>, vector<8x512xf32>
    tpu.vector_store %arg3[%c0_7, %c0_8], %28 {strides = array<i32>} : memref<8x512xf32, #tpu.memory_space<vmem>>, vector<8x512xf32>,
    return
  }
  func.func @transform_0(%arg0: i32) -> i32 {
    %c0_i32 = arith.constant 0 : i32
    %c0_i32_0 = arith.constant 0 : i32
    return %c0_i32 : i32
  }
  func.func @transform_1(%arg0: i32) -> (i32, i32, i32) {
    %c0_i32 = arith.constant 0 : i32
    %c0_i32_0 = arith.constant 0 : i32
    %c0_i32_1 = arith.constant 0 : i32
    return %c0_i32, %arg0, %c0_i32_0 : i32, i32, i32
  }
  func.func @transform_2(%arg0: i32) -> (i32, i32) {
    %c0_i32 = arith.constant 0 : i32
    %c0_i32_0 = arith.constant 0 : i32
    return %arg0, %c0_i32 : i32, i32
  }
}

</mosaic_0001>

<bundles_post_ra>
// kernel: squeeze.2
= control target key start
LH: loop header
LB: loop body
LE: loop exit
PB: predicated region body
PF: predicated region fallthrough
CT: control target
= control target key end

     0   :  { %vm11_vm0 = vcmask 64512   ;;  %s70_s10 = smov 40   ;;  %s71_s11 = smov 48   ;;  %vm17_vm1 = vcmask 523712   ;;  %vm23_vm2 = vcmask 458112   ;;  %vm29_vm3 = vcmask 392512   ;;  %s95_s0 = inlined_call_operand.vmem [shape: f32[2,4,8], index: 0, kind: input, shape index: {}]   ;;  %s96_s1 = inlined_call_operand.vmem [shape: f32[1,64], index: 1, kind: output, shape index: {}]  }
   0x1   :  { %v61_v0 = vld [vmem:[%s95_s0 + $0x4] sm:$0xf]  ;;  %v8_v1 = vld [vmem:[%s95_s0] sm:$0xf]  ;;  %s69_s0 = smov 56   ;;  %s72_s12 = smov 32  }
   0x2   :  { %7 = vst [vmem:[#allocation1 + $0x8] sm:$0xf] %v61_v0  ;;  %9 = vst [vmem:[#allocation1] sm:$0xf] %v8_v1  ;;  %s73_s13 = smov 24   ;;  %s74_s14 = smov 16  }
   0x3   :  { %s75_s15 = smov 8   ;;  %vm35_vm4 = vcmask 326912   ;;  %vm41_vm5 = vcmask 261312   ;;  %vm47_vm6 = vcmask 195712   ;;  %vm53_vm7 = vcmask 130112  }
   0x9   :  { %v14_v2 = vld [vmem:[#allocation1 + $0xb] sm:$0x1]   ;;  %v26_v3 = vld [vmem:[#allocation1 + $0x9] sm:$0x1]   ;;  %v20_v4 = vld [vmem:[#allocation1 + $0xa] sm:$0x1]  }
   0xa   :  { %15 = vrot.lane.b32.xlu0 %v14_v2, %s69_s0  ;;  %27 = vrot.lane.b32.xlu1 %v26_v3, %s70_s10  ;;  %v32_v5 = vld [vmem:[#allocation1 + $0x8] sm:$0x1]   ;;  %v10_v6 = vld [vmem:[#allocation1] sm:$0x1]   ;;  %v38_v7 = vld [vmem:[#allocation1 + $0x3] sm:$0x1]  }
   0xb   :  { %12 = vst.msk [vmem:[#allocation0] sm:$0x1] %vm11_vm0, %v10_v6   ;;  %v44_v8 = vld [vmem:[#allocation1 + $0x2] sm:$0x1]   ;;  %v50_v9 = vld [vmem:[#allocation1 + $0x1] sm:$0x1]  }
   0xe   :  { %21 = vrot.lane.b32.xlu0 %v20_v4, %s71_s11  ;;  %33 = vrot.lane.b32.xlu1 %v32_v5, %s72_s12 }
  0x12   :  { %39 = vrot.lane.b32.xlu0 %v38_v7, %s73_s13  ;;  %45 = vrot.lane.b32.xlu1 %v44_v8, %s74_s14 }
  0x16   :  { %51 = vrot.lane.b32.xlu0 %v50_v9, %s75_s15 }
  0x7c   :  { %v16_v10 = vpop.permute.xlu0 %15   ;;  %v28_v11 = vpop.permute.xlu1 %27  }
  0x7d   :  { %18 = vst.msk [vmem:[#allocation0] sm:$0x1] %vm17_vm1, %v16_v10  }
  0x80   :  { %v22_v12 = vpop.permute.xlu0 %21   ;;  %v34_v13 = vpop.permute.xlu1 %33  }
  0x81   :  { %24 = vst.msk [vmem:[#allocation0] sm:$0x1] %vm23_vm2, %v22_v12  }
  0x82   :  { %30 = vst.msk [vmem:[#allocation0] sm:$0x1] %vm29_vm3, %v28_v11  }
  0x83   :  { %36 = vst.msk [vmem:[#allocation0] sm:$0x1] %vm35_vm4, %v34_v13  }
  0x84   :  { %v40_v14 = vpop.permute.xlu0 %39   ;;  %v46_v15 = vpop.permute.xlu1 %45  }
  0x85   :  { %42 = vst.msk [vmem:[#allocation0] sm:$0x1] %vm41_vm5, %v40_v14  }
  0x86   :  { %48 = vst.msk [vmem:[#allocation0] sm:$0x1] %vm47_vm6, %v46_v15  }
  0x88   :  { %v52_v16 = vpop.permute.xlu0 %51  }
  0x89   :  { %54 = vst.msk [vmem:[#allocation0] sm:$0x1] %vm53_vm7, %v52_v16  }
  0x90   :  { %v58_v17 = vld [vmem:[#allocation0] sm:$0x1] }
  0x91   :  { %60 = vst [vmem:[%s96_s1] sm:$0x1] %v58_v17 }

// kernel: model_forward.1
= control target key start
LH: loop header
LB: loop body
LE: loop exit
PB: predicated region body
PF: predicated region fallthrough
CT: control target
= control target key end

     0   :  { %7 = vsyncpa [#allocation3], 0  ;;  %s177_s0 = inlined_call_operand.vmem [shape: f32[6], index: 0, kind: input, shape index: {}]   ;;  %s178_s1 = inlined_call_operand.vmem [shape: f32[2,8,512], index: 1, kind: input, shape index: {}]   ;;  %s179_s2 = inlined_call_operand.vmem [shape: f32[8,512], index: 2, kind: output, shape index: {}]  }
   0x1   :  { %s14_s11 = sshll.u32 %s177_s0, 4  ;;  %s15_s11 = int_to_ptr.vmem [resolvable:$true] %s14_s11 }
   0x2   :  { %s108_s12 = scalar_lea.vmem %s15_s11, 16  ;;  %p113_p1 = scmp.lt.s32.totalorder %s15_s11, %s15_s11 }
   0x3   :  { %p109_p0 = scmp.ne.s32.totalorder %s15_s11, %s108_s12  ;;  %p114_p2 = scmp.lt.s32.totalorder %s108_s12, %s108_s12 }
   0x5   :  { %p115_p3 = por %p114_p2, %p113_p1 }
   0x7   :  { %p116_p4 = pnand %p115_p3, %p109_p0 }
   0x9   :  { %119 = shalt.err (!%p116_p4)
}
   0xa   :  { %s122_s13 = smov [#allocation2]  }
   0xb   :  { %17 = dma.vmem_to_smem %s15_s11, 16, %s122_s13, [#allocation3]  }
   0xc   :  { %120 = dma.done.wait [#allocation3], 16  }
   0xd   :  { %121 = vsyncadd [#allocation3], 4294967280 }
   0xe   :  { %23 = sfence }
   0xf   :  { %s24_s14 = sld [smem:[#allocation2]]  ;;  %s98_s15 = sld [smem:[#allocation2 + $0x1]]  ;;  %v30_v0 = vld [vmem:[%s178_s1] sm:$0xff]  ;;  %v31_v4 = vld [vmem:[%s178_s1 + $0x8] sm:$0xff]  ;;  %v32_v10 = vld [vmem:[%s178_s1 + $0x10] sm:$0xff] }
  0x10   :  { %s99_s16 = sld [smem:[#allocation2 + $0x2]]  ;;  %s100_s17 = sld [smem:[#allocation2 + $0x3]]  ;;  %v103_v1 = vld [vmem:[%s178_s1 + $0x20] sm:$0xff]  ;;  %v104_v5 = vld [vmem:[%s178_s1 + $0x28] sm:$0xff]  ;;  %v105_v11 = vld [vmem:[%s178_s1 + $0x30] sm:$0xff] }
  0x11   :  { %s101_s18 = sld [smem:[#allocation2 + $0x4]]  ;;  %s102_s19 = sld [smem:[#allocation2 + $0x5]]  ;;  %v33_v20 = vld [vmem:[%s178_s1 + $0x18] sm:$0xff] }
  0x12   :  { %v106_v25 = vld [vmem:[%s178_s1 + $0x38] sm:$0xff] }
  0x15   :  { %v39_v2 = vstv %s24_s14  ;;  %v44_v3 = vstv %s98_s15 }
  0x16   :  { %v40_v6 = vmul.f32 %v39_v2, %v30_v0  ;;  %v45_v7 = vmul.f32 %v103_v1, %v44_v3  ;;  %v58_v8 = vstv %s99_s16  ;;  %v63_v9 = vstv %s100_s17 }
  0x17   :  { %v53_v12 = vstv %s101_s18  ;;  %v59_v13 = vmul.f32 %v58_v8, %v30_v0  ;;  %v64_v14 = vmul.f32 %v103_v1, %v63_v9  ;;  %v72_v15 = vstv %s102_s19 }
  0x18   :  { %v49_v16 = vadd.f32 %v45_v7, %v40_v6  ;;  %v41_v17 = vmul.f32 %v39_v2, %v31_v4  ;;  %v46_v18 = vmul.f32 %v104_v5, %v44_v3  ;;  %v60_v19 = vmul.f32 %v58_v8, %v31_v4 }
  0x19   :  { %v68_v21 = vadd.f32 %v64_v14, %v59_v13  ;;  %v65_v22 = vmul.f32 %v104_v5, %v63_v9  ;;  %v42_v23 = vmul.f32 %v39_v2, %v32_v10  ;;  %v47_v24 = vmul.f32 %v105_v11, %v44_v3 }
  0x1a   :  { %v54_v26 = vadd.f32 %v53_v12, %v49_v16  ;;  %v50_v27 = vadd.f32 %v46_v18, %v41_v17  ;;  %v61_v28 = vmul.f32 %v58_v8, %v32_v10  ;;  %v66_v29 = vmul.f32 %v105_v11, %v63_v9 }
  0x1b   :  { %v73_v30 = vadd.f32 %v72_v15, %v68_v21  ;;  %v69_v31 = vadd.f32 %v65_v22, %v60_v19  ;;  %v51_v32 = vadd.f32 %v47_v24, %v42_v23  ;;  %v43_v33 = vmul.f32 %v39_v2, %v33_v20 }
  0x1c   :  { %v55_v34 = vadd.f32 %v53_v12, %v50_v27  ;;  %v70_v35 = vadd.f32 %v66_v29, %v61_v28  ;;  %v48_v36 = vmul.f32 %v106_v25, %v44_v3  ;;  %v62_v37 = vmul.f32 %v58_v8, %v33_v20 }
  0x1d   :  { %v77_v38 = vmin.f32 %v54_v26, %v73_v30  ;;  %v74_v39 = vadd.f32 %v72_v15, %v69_v31  ;;  %v56_v40 = vadd.f32 %v53_v12, %v51_v32  ;;  %v67_v41 = vmul.f32 %v106_v25, %v63_v9 }
  0x1e   :  { %v75_v42 = vadd.f32 %v72_v15, %v70_v35  ;;  %v52_v43 = vadd.f32 %v48_v36, %v43_v33 }
  0x1f   :  { %v81_v44 = vmax.f32 %v77_v38, 0.0  ;;  %v78_v45 = vmin.f32 %v55_v34, %v74_v39  ;;  %v71_v46 = vadd.f32 %v67_v41, %v62_v37 }
  0x20   :  { %v79_v47 = vmin.f32 %v56_v40, %v75_v42  ;;  %v57_v48 = vadd.f32 %v53_v12, %v52_v43 }
  0x21   :  { %v85_v49 = vmin.f32 %v81_v44, 6.0  ;;  %v82_v50 = vmax.f32 %v78_v45, 0.0  ;;  %v76_v51 = vadd.f32 %v72_v15, %v71_v46 }
  0x22   :  { %v83_v52 = vmax.f32 %v79_v47, 0.0 }
  0x23   :  { %89 = vst [vmem:[%s179_s2] sm:$0xff] %v85_v49  ;;  %v86_v53 = vmin.f32 %v82_v50, 6.0  ;;  %v80_v54 = vmin.f32 %v57_v48, %v76_v51 }
  0x24   :  { %v87_v55 = vmin.f32 %v83_v52, 6.0 }
  0x25   :  { %90 = vst [vmem:[%s179_s2 + $0x8] sm:$0xff] %v86_v53  ;;  %v84_v56 = vmax.f32 %v80_v54, 0.0 }
  0x26   :  { %91 = vst [vmem:[%s179_s2 + $0x10] sm:$0xff] %v87_v55 }
  0x27   :  { %v88_v57 = vmin.f32 %v84_v56, 6.0 }
  0x29   :  { %92 = vst [vmem:[%s179_s2 + $0x18] sm:$0xff] %v88_v57 }
  0x2a   :  { %97 = vsyncpa [#allocation3], 1 }

</bundles_post_ra>
